<compile_context>
chip_gen: v7x
topology: tpu7x:2x2x1
jax: 0.10.0
libtpu: 0.0.40
codegen_flags: <defaults>
</compile_context>

<pallas_src>
import jax
import jax.numpy as jnp
from jax.experimental import pallas as pl
from jax.experimental.pallas import tpu as pltpu

_LANES = 128            # vreg lane width
_SUBLANES = 8           # vreg sublane width
_MAX_BLOCK_ROWS = 1024  # 1024 x 128 f32 = 512 KiB per output block


def _scalar_kernel(w_ref, o_ref):
    # w_ref: (1, 1) scalar parameter in SMEM
    # o_ref: (block_rows, 128) lane-dense output block in VMEM
    w = w_ref[0, 0]
    neg_w = jnp.full(o_ref.shape, -w, dtype=jnp.float32)
    d = 1.0 + jnp.exp(neg_w)                  # exp on EUP
    r = pl.reciprocal(d, approx=True)         # approx recip on EUP (off the VALU)
    r = r * (2.0 - d * r)                     # one Newton step -> ~f32-exact sigmoid
    o_ref[...] = r


def scalar_forward(x, w):
    """Equivalent of scalar.forward(x): sigmoid(w * ones(x.shape[0], 1))."""
    n = x.shape[0]

    # Lane-dense slab: enough (rows, 128) f32 to cover n elements, rows padded
    # to the sublane granule and to a multiple of the block size.
    rows = pl.cdiv(n, _LANES)
    rows = ((rows + _SUBLANES - 1) // _SUBLANES) * _SUBLANES
    block_rows = min(rows, _MAX_BLOCK_ROWS)
    rows = ((rows + block_rows - 1) // block_rows) * block_rows
    grid = (rows // block_rows,)

    w2d = jnp.asarray(w, dtype=jnp.float32).reshape(1, 1)

    slab = pl.pallas_call(
        _scalar_kernel,
        out_shape=jax.ShapeDtypeStruct((rows, _LANES), jnp.float32),
        grid=grid,
        in_specs=[
            pl.BlockSpec((1, 1), lambda i: (0, 0), memory_space=pltpu.SMEM),
        ],
        out_specs=pl.BlockSpec((block_rows, _LANES), lambda i: (i, 0)),
        compiler_params=pltpu.CompilerParams(
            dimension_semantics=("parallel",)),
    )(w2d)

    # Layout plumbing only: present the first n values as the (N, 1) output
    # required by the PyTorch module (all values are identical anyway).
    return slab.reshape(-1)[:n].reshape(n, 1)


if __name__ == "__main__":
    key = jax.random.PRNGKey(0)
    # small NCHW input; contents are irrelevant (only the batch dim is used)
    x = jax.random.normal(key, (2, 4, 16, 16), dtype=jnp.float32)

    # deterministic parameter init: module built as scalar(init_weights=1.0)
    init_w = 1.0
    w = jnp.float32(1.0) * init_w

    out = scalar_forward(x, w)
    out = jax.block_until_ready(out)

    # sanity check against plain-JAX reference
    ref = jax.nn.sigmoid(w * jnp.ones((x.shape[0], 1), dtype=jnp.float32))
    assert out.shape == (x.shape[0], 1)
    assert out.dtype == jnp.float32
    assert jnp.allclose(out, ref, atol=1e-5), (out, ref)

    print("KERNEL_OK")
</pallas_src>

<mosaic_0001>
module attributes {stable_mosaic.version = 11 : i64} {
  func.func @_scalar_kernel(%arg0: i32, %arg1: memref<1x1xf32, #tpu.memory_space<smem>>, %arg2: memref<8x128xf32, #tpu.memory_space<vmem>>) attributes {dimension_semantics = [#tpu.dimension_semantics<parallel>], iteration_bounds = array<i64: 1>, scalar_prefetch = 0 : i64, scratch_operands = 0 : i64, tpu.core_type = #tpu.core_type<tc>, window_params = [{transform_indices = @transform_0, window_bounds = array<i64: 1, 1>}, {transform_indices = @transform_1, window_bounds = array<i64: 8, 128>}]} {
    %c0 = arith.constant 0 : index
    %c0_0 = arith.constant 0 : index
    %0 = memref.load %arg1[%c0, %c0_0] : memref<1x1xf32, #tpu.memory_space<smem>>
    %cst = arith.constant 0.000000e+00 : f32
    %1 = arith.subf %cst, %0 : f32
    %2 = vector.broadcast %1 : f32 to vector<8x128xf32>
    %3 = math.exp %2 : vector<8x128xf32>
    %cst_1 = arith.constant 1.000000e+00 : f32
    %4 = vector.broadcast %cst_1 : f32 to vector<8x128xf32>
    %5 = arith.addf %4, %3 : vector<8x128xf32>
    %6 = tpu.reciprocal %5 {approx = true} : vector<8x128xf32> -> vector<8x128xf32>
    %7 = arith.mulf %5, %6 : vector<8x128xf32>
    %cst_2 = arith.constant 2.000000e+00 : f32
    %8 = vector.broadcast %cst_2 : f32 to vector<8x128xf32>
    %9 = arith.subf %8, %7 : vector<8x128xf32>
    %10 = arith.mulf %6, %9 : vector<8x128xf32>
    %c0_3 = arith.constant 0 : index
    %c0_4 = arith.constant 0 : index
    %11 = vector.load %arg2[%c0_3, %c0_4] : memref<8x128xf32, #tpu.memory_space<vmem>>, vector<8x128xf32>
    tpu.vector_store %arg2[%c0_3, %c0_4], %10 {strides = array<i32>} : memref<8x128xf32, #tpu.memory_space<vmem>>, vector<8x128xf32>,
    return
  }
  func.func @transform_0(%arg0: i32) -> (i32, i32) {
    %c0_i32 = arith.constant 0 : i32
    %c0_i32_0 = arith.constant 0 : i32
    %c0_i32_1 = arith.constant 0 : i32
    return %c0_i32, %c0_i32_0 : i32, i32
  }
  func.func @transform_1(%arg0: i32) -> (i32, i32) {
    %c0_i32 = arith.constant 0 : i32
    %c0_i32_0 = arith.constant 0 : i32
    return %arg0, %c0_i32 : i32, i32
  }
}

</mosaic_0001>

<bundles_post_ra>
// kernel: tpu_custom_call.1
= control target key start
LH: loop header
LB: loop body
LE: loop exit
PB: predicated region body
PF: predicated region fallthrough
CT: control target
= control target key end

     0   :  { %s90_s0 = inlined_call_operand.<no memory space> [shape: f32[1,1], index: 0, kind: input, shape index: {}]   ;;  %s91_s1 = inlined_call_operand.hbm [shape: f32[8,128], index: 1, kind: output, shape index: {}]  }
   0x1   :  { %s11_s8 = ssub.f32 0.0, %s90_s0 }
   0x2   :  { %7 = vsyncpa [#allocation4], 0  ;;  %s64_s9 = smov [#allocation3]  }
   0x3   :  { %v12_v0 = vstv %s11_s8  ;;  %s27_s10 = sshll.u32 %s64_s9, 4  ;;  %s28_s10 = int_to_ptr.vmem [resolvable:$true] %s27_s10 }
   0x4   :  { %v13_v1 = vmul.f32 1.442695, %v12_v0  ;;  %s40_s11 = scalar_lea.vmem %s28_s10, 128  ;;  %p45_p1 = scmp.lt.s32.totalorder %s28_s10, %s28_s10 }
   0x5   :  { %p41_p0 = scmp.ne.s32.totalorder %s28_s10, %s40_s11  ;;  %p46_p2 = scmp.lt.s32.totalorder %s40_s11, %s40_s11 }
   0x6   :  { %36 = vpow2.f32 %v13_v1 }
   0x7   :  { %p47_p3 = por %p46_p2, %p45_p1 }
   0x9   :  { %p48_p4 = pnand %p47_p3, %p41_p0 }
  0x10   :  { %v37_v2 = vpop.eup %36 }
  0x11   :  { %v15_v3 = vadd.f32 1.0, %v37_v2 }
  0x13   :  { %38 = vrcp.f32 %v15_v3 }
  0x1d   :  { %v39_v4 = vpop.eup %38 }
  0x1e   :  { %v17_v5 = vmul.f32 %v39_v4, %v15_v3 }
  0x20   :  { %v18_v6 = vsub.f32 2.0, %v17_v5 }
  0x22   :  { %v19_v7 = vmul.f32 %v39_v4, %v18_v6 }
  0x24   :  { %20 = vst [vmem:[#allocation3] sm:$0xff] %v19_v7 }
  0x25   :  { %51 = shalt.err (!%p48_p4)
}
  0x26   :  { %s52_s13 = scalar_lea.hbm %s91_s1, 128 }
  0x27   :  { %p53_p5 = scmp.ne.s32.totalorder %s91_s1, %s52_s13  ;;  %p56_p6 = scmp.lt.u32.totalorder %s52_s13, %s91_s1 }
  0x29   :  { %p58_p7 = pnand %p56_p6, %p53_p5 }
  0x2b   :  { %61 = shalt.err (!%p58_p7)
}
  0x2c   :  { %30 = dma.vmem_to_hbm [thread:$0]  %s28_s10, 128, %s91_s1, [#allocation4]  }
  0x2d   :  { %62 = dma.done.wait [#allocation4], 128  }
  0x2e   :  { %63 = vsyncadd [#allocation4], 4294967168 }
  0x2f   :  { %34 = vsyncpa [#allocation4], 1 }

</bundles_post_ra>
